<compile_context>
chip_gen: v6e
topology: v6e:2x2x1
jax: 0.10.0
libtpu: 0.0.40
codegen_flags: <defaults>
</compile_context>

<pallas_src>
import math

import jax
import jax.numpy as jnp
from jax.experimental import pallas as pl
from jax.experimental.pallas import tpu as pltpu


def make_positional_encoding(d_model: int, max_len: int = 1000) -> jnp.ndarray:
    """Deterministic sinusoidal table, identical to the PyTorch __init__."""
    position = jnp.arange(0, max_len, dtype=jnp.float32)[:, None]            # (L, 1)
    div_term = jnp.exp(
        jnp.arange(0, d_model, 2, dtype=jnp.float32) * (-math.log(10000.0) / d_model)
    )                                                                        # (ceil(D/2),)
    pe = jnp.zeros((max_len, d_model), dtype=jnp.float32)
    pe = pe.at[:, 0::2].set(jnp.sin(position * div_term))
    if d_model % 2 == 1:
        pe = pe.at[:, 1::2].set(jnp.cos(position * div_term[:-1]))
    else:
        pe = pe.at[:, 1::2].set(jnp.cos(position * div_term))
    return pe


# --------------------------------------------------------------------------
# Tiling policy (trace-time Python; negligible cost).
# --------------------------------------------------------------------------
_TARGET_TILE_BYTES = 2 * 1024 * 1024    # per x/out tile; double-buffered footprint ~8-12 MiB
_PALLAS_MIN_BYTES = 2 * 1024 * 1024     # below this, XLA's fused add is strictly faster
_MIN_GRID_STEPS = 8                     # 2 TCs (v7x) x >= 4 steps/core for DMA overlap
_ROW_TILE_CAP = 512
_MAX_ROW_BLOCK_BYTES = 8 * 1024 * 1024  # sanity guard for pathological row extents
_VMEM_LIMIT_BYTES = 32 * 1024 * 1024    # safe on v5e/v6e (128 MiB phys) and v7x (64 MiB phys)


def _sublane_quantum(itemsize: int) -> int:
    # Sub-32-bit dtypes pack along sublanes: 8 rows/vreg f32, 16 bf16, 32 int8/fp8.
    return {4: 8, 2: 16, 1: 32}.get(itemsize, 8)


def _largest_divisor_multiple(total: int, multiple: int, cap: int):
    """Largest t <= cap with t % multiple == 0 and total % t == 0 (or None)."""
    best = None
    t = multiple
    cap = min(cap, total)
    while t <= cap:
        if total % t == 0:
            best = t
        t += multiple
    return best


def _choose_fold(B: int, S: int, q: int) -> int:
    """Smallest k | S making B*k a multiple of q (sublane-dense rows); only used for B < q."""
    for k in range(1, S + 1):
        if S % k == 0 and (B * k) % q == 0:
            return k
    for k in range(1, S + 1):                 # no exact multiple: at least reach q rows
        if S % k == 0 and B * k >= q:
            return k
    return S


def _pick_row_tile(R: int, q: int, k: int) -> int:
    if R <= _ROW_TILE_CAP:
        return R                              # full extent: always legal, dense by construction
    step = (q * k) // math.gcd(q, k)          # multiple of q (density) and of k (pe cycle)
    t = _largest_divisor_multiple(R, step, _ROW_TILE_CAP)
    return t if t is not None else R


def _pick_col_tile(Fc: int, row_tile: int, num_row_tiles: int, itemsize: int):
    """Lane-dense column tile that satisfies the VMEM budget AND the grid-step floor."""
    budget_elems = max(128, _TARGET_TILE_BYTES // (itemsize * row_tile))
    if Fc % 128 != 0:
        # Only legal as a single full-extent column block.  Tiny shapes are fine;
        # large odd shapes go back to XLA (no over-budget block, no masked-store slab).
        if Fc * row_tile * itemsize <= _TARGET_TILE_BYTES:
            return Fc
        # TODO(synk): pad the flattened feature axis to the next multiple of 128
        # (pad x2/pe2, slice the output) instead of falling back for large odd S*D.
        return None
    want_col_tiles = max(1, -(-_MIN_GRID_STEPS // num_row_tiles))      # ceil-div
    step_cap = max(128, (Fc // want_col_tiles) // 128 * 128)
    cap = max(128, min(budget_elems, step_cap))
    t = _largest_divisor_multiple(Fc, 128, cap)
    return t if t is not None else 128        # Fc % 128 == 0 ⇒ 128 always divides Fc


# --------------------------------------------------------------------------
# Kernel
# --------------------------------------------------------------------------
def _pos_enc_kernel(x_ref, pe_ref, o_ref):
    # x_ref / o_ref: (row_tile, col_tile)   lane-dense, unmasked vst
    # pe_ref:        (pe_rows, col_tile)    pe_rows == 1 (broadcast) or == row_tile
    o_ref[...] = (x_ref[...] + pe_ref[...]).astype(o_ref.dtype)


def positional_encoding_forward(x: jnp.ndarray, pe: jnp.ndarray,
                                *, force_pallas: bool = False) -> jnp.ndarray:
    """x: (B, S, D); pe: (max_len, D) -> (B, S, D) == x + pe[:S][None]."""
    B, S, D = x.shape
    pe_slice = pe[:S, :]                                   # static slice (glue)
    out_dtype = jnp.result_type(x.dtype, pe_slice.dtype)   # PyTorch-style promotion

    def _xla_path():
        return (x + pe_slice[None, :, :]).astype(out_dtype)

    x_itemsize = jnp.dtype(x.dtype).itemsize
    out_itemsize = jnp.dtype(out_dtype).itemsize
    max_itemsize = max(x_itemsize, out_itemsize)
    if not force_pallas and x.size * x_itemsize < _PALLAS_MIN_BYTES:
        return _xla_path()                                  # launch overhead dominates

    q = _sublane_quantum(min(x_itemsize, out_itemsize))
    F = S * D

    # Fold a factor of S into the row axis only when the batch is sublane-sparse.
    if B % q == 0 or B >= q:
        k = 1
    else:
        k = _choose_fold(B, S, q)
    R = B * k
    Fc = F // k

    row_tile = _pick_row_tile(R, q, k)
    if row_tile * 128 * max_itemsize > _MAX_ROW_BLOCK_BYTES:
        return _xla_path()                                  # pathological row extent
    num_row_tiles = R // row_tile
    col_tile = _pick_col_tile(Fc, row_tile, num_row_tiles, max_itemsize)
    if col_tile is None:
        return _xla_path()
    num_col_tiles = Fc // col_tile

    # Free reshapes (row-major contiguity preserved) into lane-dense 2D slabs.
    x2 = x.reshape(R, Fc)
    pe2 = pe_slice.reshape(k, Fc)
    if k > 1 and row_tile > k:
        # row_tile is a multiple of k, so one tiled pe block serves every row block
        # with a constant block index (no pe re-DMA across the inner row loop).
        pe2 = jnp.tile(pe2, (row_tile // k, 1))
    pe_rows = pe2.shape[0]

    cost = pl.CostEstimate(
        flops=R * Fc,
        transcendentals=0,
        bytes_accessed=(x2.size * x_itemsize
                        + R * Fc * out_itemsize
                        + pe2.size * jnp.dtype(pe2.dtype).itemsize),
    )

    out2 = pl.pallas_call(
        _pos_enc_kernel,
        out_shape=jax.ShapeDtypeStruct((R, Fc), out_dtype),
        grid_spec=pltpu.PrefetchScalarGridSpec(
            num_scalar_prefetch=0,
            # Column axis OUTER, row axis INNER: the pe block index depends only on
            # the column tile, so the pe tile stays resident across the inner loop.
            grid=(num_col_tiles, num_row_tiles),
            in_specs=[
                pl.BlockSpec((row_tile, col_tile), lambda c, r: (r, c)),   # x
                pl.BlockSpec((pe_rows, col_tile), lambda c, r: (0, c)),    # pe (reused)
            ],
            out_specs=pl.BlockSpec((row_tile, col_tile), lambda c, r: (r, c)),
        ),
        compiler_params=pltpu.CompilerParams(
            dimension_semantics=("parallel", "parallel"),
            vmem_limit_bytes=_VMEM_LIMIT_BYTES,
        ),
        cost_estimate=cost,
    )(x2, pe2)

    return out2.reshape(B, S, D)


if __name__ == "__main__":
    max_len = 1000
    key = jax.random.PRNGKey(0)
    k1, k2 = jax.random.split(key)

    # --- Small shape consistent with the module: batch=2, seq=8, d_model=32 ---
    B, S, D = 2, 8, 32
    x_small = jax.random.normal(k1, (B, S, D), dtype=jnp.float32)
    pe_small = make_positional_encoding(D, max_len)

    # Forced past the small-problem bypass so the Pallas kernel itself runs.
    out_small = jax.block_until_ready(
        positional_encoding_forward(x_small, pe_small, force_pallas=True))
    ref_small = x_small + pe_small[:S, :][None, :, :]
    assert out_small.shape == (B, S, D)
    assert jnp.allclose(out_small, ref_small, atol=1e-6, rtol=1e-6)

    # Default path at this size takes the plain-XLA bypass; check it too.
    out_bypass = jax.block_until_ready(positional_encoding_forward(x_small, pe_small))
    assert jnp.allclose(out_bypass, ref_small, atol=1e-6, rtol=1e-6)

    # --- Modest shape exercising the multi-step pipelined grid + pe reuse ---
    B2, S2, D2 = 8, 512, 256
    x_big = jax.random.normal(k2, (B2, S2, D2), dtype=jnp.float32)
    pe_big = make_positional_encoding(D2, max_len)
    out_big = jax.block_until_ready(positional_encoding_forward(x_big, pe_big))
    ref_big = x_big + pe_big[:S2, :][None, :, :]
    assert out_big.shape == (B2, S2, D2)
    assert jnp.allclose(out_big, ref_big, atol=1e-6, rtol=1e-6)

    # --- Small batch at a real size: exercises the sublane-dense S-fold path ---
    B3, S3, D3 = 2, 512, 512
    x_mid = jax.random.normal(k1, (B3, S3, D3), dtype=jnp.float32)
    pe_mid = make_positional_encoding(D3, max_len)
    out_mid = jax.block_until_ready(positional_encoding_forward(x_mid, pe_mid))
    ref_mid = x_mid + pe_mid[:S3, :][None, :, :]
    assert jnp.allclose(out_mid, ref_mid, atol=1e-6, rtol=1e-6)

    print("KERNEL_OK")
</pallas_src>

<mosaic_0001>
module attributes {stable_mosaic.version = 11 : i64} {
  func.func @_pos_enc_kernel(%arg0: i32, %arg1: i32, %arg2: memref<8x64xf32, #tpu.memory_space<vmem>>, %arg3: memref<8x64xf32, #tpu.memory_space<vmem>>, %arg4: memref<8x64xf32, #tpu.memory_space<vmem>>) attributes {dimension_semantics = [#tpu.dimension_semantics<parallel>, #tpu.dimension_semantics<parallel>], iteration_bounds = array<i64: 1, 1>, scalar_prefetch = 0 : i64, scratch_operands = 0 : i64, tpu.core_type = #tpu.core_type<tc>, window_params = [{transform_indices = @transform_0, window_bounds = array<i64: 8, 64>}, {transform_indices = @transform_1, window_bounds = array<i64: 8, 64>}, {transform_indices = @transform_2, window_bounds = array<i64: 8, 64>}]} {
    %c0 = arith.constant 0 : index
    %c0_0 = arith.constant 0 : index
    %0 = vector.load %arg2[%c0, %c0_0] : memref<8x64xf32, #tpu.memory_space<vmem>>, vector<8x64xf32>
    %c0_1 = arith.constant 0 : index
    %c0_2 = arith.constant 0 : index
    %1 = vector.load %arg3[%c0_1, %c0_2] : memref<8x64xf32, #tpu.memory_space<vmem>>, vector<8x64xf32>
    %2 = arith.addf %0, %1 : vector<8x64xf32>
    %c0_3 = arith.constant 0 : index
    %c0_4 = arith.constant 0 : index
    %3 = vector.load %arg4[%c0_3, %c0_4] : memref<8x64xf32, #tpu.memory_space<vmem>>, vector<8x64xf32>
    tpu.vector_store %arg4[%c0_3, %c0_4], %2 {strides = array<i32>} : memref<8x64xf32, #tpu.memory_space<vmem>>, vector<8x64xf32>,
    return
  }
  func.func @transform_0(%arg0: i32, %arg1: i32) -> (i32, i32) {
    %c0_i32 = arith.constant 0 : i32
    return %arg1, %arg0 : i32, i32
  }
  func.func @transform_1(%arg0: i32, %arg1: i32) -> (i32, i32) {
    %c0_i32 = arith.constant 0 : i32
    %c0_i32_0 = arith.constant 0 : i32
    return %c0_i32, %arg0 : i32, i32
  }
  func.func @transform_2(%arg0: i32, %arg1: i32) -> (i32, i32) {
    %c0_i32 = arith.constant 0 : i32
    return %arg1, %arg0 : i32, i32
  }
}

</mosaic_0001>

<bundles_post_ra>
// kernel: tpu_custom_call.1
= control target key start
LH: loop header
LB: loop body
LE: loop exit
PB: predicated region body
PF: predicated region fallthrough
CT: control target
= control target key end

     0   :  { %7 = vsyncpa [#allocation3], 0  ;;  %s153_s0 = inlined_call_operand.hbm [shape: f32[8,64], index: 0, kind: input, shape index: {}]   ;;  %s154_s1 = inlined_call_operand.hbm [shape: f32[8,64], index: 1, kind: input, shape index: {}]   ;;  %s155_s2 = inlined_call_operand.hbm [shape: f32[8,64], index: 2, kind: output, shape index: {}]  }
   0x1   :  { %8 = vsyncpa [#allocation6], 0 }
   0x2   :  { %9 = vsyncpa [#allocation4], 0  ;;  %s126_s9 = smov [#allocation2]   ;;  %s127_s11 = smov [#allocation5]  }
   0x3   :  { %s16_s10 = sshll.u32 %s126_s9, 4  ;;  %s26_s12 = sshll.u32 %s127_s11, 4  ;;  %s17_s10 = int_to_ptr.vmem [resolvable:$true] %s16_s10  ;;  %s27_s12 = int_to_ptr.vmem [resolvable:$true] %s26_s12 }
   0x4   :  { %s68_s13 = scalar_lea.vmem %s17_s10, 128  ;;  %p73_p1 = scmp.lt.s32.totalorder %s17_s10, %s17_s10 }
   0x5   :  { %p69_p0 = scmp.ne.s32.totalorder %s17_s10, %s68_s13  ;;  %p74_p2 = scmp.lt.s32.totalorder %s68_s13, %s68_s13 }
   0x7   :  { %p75_p3 = por %p74_p2, %p73_p1 }
   0x9   :  { %p76_p4 = pnand %p75_p3, %p69_p0 }
   0xb   :  { %79 = shalt.err (!%p76_p4)
}
   0xc   :  { %19 = dma.hbm_to_vmem [thread:$0]  %s153_s0, 128, %s17_s10, [#allocation3]  }
   0xd   :  { %s88_s16 = scalar_lea.vmem %s27_s12, 128  ;;  %p93_p6 = scmp.lt.s32.totalorder %s27_s12, %s27_s12 }
   0xe   :  { %p89_p5 = scmp.ne.s32.totalorder %s27_s12, %s88_s16  ;;  %p94_p7 = scmp.lt.s32.totalorder %s88_s16, %s88_s16 }
  0x10   :  { %p95_p8 = por %p94_p7, %p93_p6 }
  0x12   :  { %p96_p9 = pnand %p95_p8, %p89_p5 }
  0x14   :  { %99 = shalt.err (!%p96_p9)
}
  0x15   :  { %29 = dma.hbm_to_vmem [thread:$0]  %s154_s1, 128, %s27_s12, [#allocation6]  }
  0x16   :  { %120 = dma.done.wait [#allocation3], 128  }
  0x17   :  { %121 = vsyncadd [#allocation3], 4294967168 }
  0x18   :  { %122 = dma.done.wait [#allocation6], 128  }
  0x19   :  { %123 = vsyncadd [#allocation6], 4294967168  ;;  %s128_s19 = smov [#allocation7]   ;;  %v36_v0 = vld [vmem:[#allocation2] sm:$0xff]  ;;  %v37_v1 = vld [vmem:[#allocation5] sm:$0xff]  ;;  %vm39_vm0 = vcmask 523264  }
  0x1a   :  { %s47_s20 = sshll.u32 %s128_s19, 4  ;;  %v38_v2 = vadd.f32 %v37_v1, %v36_v0  ;;  %s48_s20 = int_to_ptr.vmem [resolvable:$true] %s47_s20 }
  0x1b   :  { %s100_s0 = scalar_lea.vmem %s48_s20, 128  ;;  %p105_p11 = scmp.lt.s32.totalorder %s48_s20, %s48_s20 }
  0x1c   :  { %40 = vst.msk [vmem:[#allocation7] sm:$0xff] %vm39_vm0, %v38_v2  ;;  %p101_p10 = scmp.ne.s32.totalorder %s48_s20, %s100_s0  ;;  %p106_p12 = scmp.lt.s32.totalorder %s100_s0, %s100_s0 }
  0x1e   :  { %p107_p13 = por %p106_p12, %p105_p11 }
  0x20   :  { %p108_p0 = pnand %p107_p13, %p101_p10 }
  0x22   :  { %111 = shalt.err (!%p108_p0)
}
  0x23   :  { %50 = dma.vmem_to_hbm [thread:$0]  %s48_s20, 128, %s155_s2, [#allocation4]  }
  0x24   :  { %124 = dma.done.wait [#allocation4], 128  }
  0x25   :  { %125 = vsyncadd [#allocation4], 4294967168 }
  0x26   :  { %54 = vsyncpa [#allocation3], 1 }
  0x27   :  { %55 = vsyncpa [#allocation6], 1 }
  0x28   :  { %56 = vsyncpa [#allocation4], 1 }

</bundles_post_ra>
